<compile_context>
chip_gen: v5e
topology: v5e:2x2
jax: 0.10.0
libtpu: 0.0.40
codegen_flags: <defaults>
</compile_context>

<pallas_src>
import functools
import math

import jax
import jax.numpy as jnp
from jax.experimental import pallas as pl
from jax.experimental.pallas import tpu as pltpu


# ----------------------------------------------------------------------------
# Helpers
# ----------------------------------------------------------------------------
def _round_up(a, b):
    return (a + b - 1) // b * b


def _vmem_budget_bytes():
    """Per-generation VMEM budget with headroom.

    v7x: 64 MiB physical -> ~48 MiB budget; v5e/v6e: 128 MiB -> ~96 MiB.
    Falls back to the conservative v7x-sized budget if the query fails.
    """
    cap = 64 * 1024 * 1024
    try:
        cap = int(pltpu.get_tpu_info().vmem_capacity_bytes)
    except Exception:
        pass
    cap = max(cap, 32 * 1024 * 1024)
    return (cap * 3) // 4


def _masked_log_softmax(z, num_valid):
    """log_softmax over the lane axis, ignoring padded class lanes."""
    col = jax.lax.broadcasted_iota(jnp.int32, z.shape, 1)
    z = jnp.where(col < num_valid, z, -jnp.inf)
    m = jnp.max(z, axis=1, keepdims=True)
    shifted = z - m
    lse = jnp.log(jnp.sum(jnp.exp(shifted), axis=1, keepdims=True))
    return shifted - lse


# ----------------------------------------------------------------------------
# Kernels
# ----------------------------------------------------------------------------
def gcn_fused_kernel(x_ref, adj_ref, w1_ref, b1_ref, w2_ref, b2_ref, out_ref,
                     *, num_class):
    """Small-graph path: everything resident, whole forward in one kernel."""
    s1 = jnp.dot(x_ref[...], w1_ref[...], preferred_element_type=jnp.float32)
    h = jnp.dot(adj_ref[...], s1.astype(jnp.bfloat16),
                preferred_element_type=jnp.float32)
    h = jnp.maximum(h + b1_ref[...], 0.0)        # bias + relu (f32)
    # dropout: identity in eval mode
    s2 = jnp.dot(h.astype(jnp.bfloat16), w2_ref[...],
                 preferred_element_type=jnp.float32)
    z = jnp.dot(adj_ref[...], s2.astype(jnp.bfloat16),
                preferred_element_type=jnp.float32) + b2_ref[...]
    out_ref[...] = _masked_log_softmax(z, num_class)


def projection_kernel(x_ref, w_ref, out_ref):
    """out[tile] = x[tile] @ W1  (bf16 in, f32 accumulate, bf16 out)."""
    out_ref[...] = jnp.dot(
        x_ref[...], w_ref[...], preferred_element_type=jnp.float32
    ).astype(out_ref.dtype)


def gcn_layer1_kernel(adj_ref, s1_ref, b1_ref, w2_ref, out_ref, acc_ref, *,
                      block_k, s1_resident):
    """acc += adj[i,k] @ support1[k]; finalize: relu(acc+b1) @ W2 -> support2."""
    k = pl.program_id(1)

    @pl.when(k == 0)
    def _():
        acc_ref[...] = jnp.zeros_like(acc_ref)

    if s1_resident:
        start = pl.multiple_of(k * block_k, block_k)
        s1 = s1_ref[pl.ds(start, block_k), :]
    else:
        s1 = s1_ref[...]

    acc_ref[...] += jnp.dot(adj_ref[...], s1, preferred_element_type=jnp.float32)

    @pl.when(k == pl.num_programs(1) - 1)
    def _():
        h = jnp.maximum(acc_ref[...] + b1_ref[...], 0.0)   # bias + relu in f32
        # dropout: identity in eval mode
        out_ref[...] = jnp.dot(
            h.astype(jnp.bfloat16), w2_ref[...],
            preferred_element_type=jnp.float32
        ).astype(out_ref.dtype)


def gcn_layer2_kernel(adj_ref, s2_ref, b2_ref, out_ref, *,
                      block_k, s2_resident, num_class):
    """out (f32, k-resident) += adj[i,k] @ support2[k]; finalize: bias + log_softmax."""
    k = pl.program_id(1)

    @pl.when(k == 0)
    def _():
        out_ref[...] = jnp.zeros_like(out_ref)

    if s2_resident:
        start = pl.multiple_of(k * block_k, block_k)
        s2 = s2_ref[pl.ds(start, block_k), :]
    else:
        s2 = s2_ref[...]

    out_ref[...] += jnp.dot(adj_ref[...], s2, preferred_element_type=jnp.float32)

    @pl.when(k == pl.num_programs(1) - 1)
    def _():
        out_ref[...] = _masked_log_softmax(out_ref[...] + b2_ref[...], num_class)


# ----------------------------------------------------------------------------
# Wrapper
# ----------------------------------------------------------------------------
def gcn_forward(x, adj, w1, b1, w2, b2, *, vmem_limit_bytes=None,
                force_tiled=False):
    N, F = x.shape
    H = w1.shape[1]
    C = w2.shape[1]
    b1 = jnp.asarray(b1).reshape(1, -1)
    b2 = jnp.asarray(b2).reshape(1, -1)

    budget = vmem_limit_bytes if vmem_limit_bytes is not None else _vmem_budget_bytes()

    Fp = _round_up(F, 128)
    Hp = _round_up(H, 128)
    Cp = _round_up(C, 128)

    # Pick tile size / Np: prefer 512 tiles but keep quadratic adj-padding
    # overhead ~<10%; fall back to 256/128 otherwise.
    base_np = _round_up(N, 128)
    Np, tile = base_np, 128
    for cand in (512, 256):
        cand_np = _round_up(N, cand)
        if cand_np * cand_np * 10 <= 11 * base_np * base_np:
            Np, tile = cand_np, cand
            break
    # (v7x: Np // tile >= 2 gives both TensorCores work on the parallel axis.)

    # ---- wrapper-side padding / casting: bf16 directly, via jnp.pad ----
    # (For a static graph in a training loop, hoist adj_p out of the step.)
    x_p = jnp.pad(x.astype(jnp.bfloat16), ((0, Np - N), (0, Fp - F)))
    adj_p = jnp.pad(adj.astype(jnp.bfloat16), ((0, Np - N), (0, Np - N)))
    w1_p = jnp.pad(w1.astype(jnp.bfloat16), ((0, Fp - F), (0, Hp - H)))
    w2_p = jnp.pad(w2.astype(jnp.bfloat16), ((0, Hp - H), (0, Cp - C)))
    b1_p = jnp.pad(b1.astype(jnp.float32), ((0, 0), (0, Hp - H)))
    b2_p = jnp.pad(b2.astype(jnp.float32), ((0, 0), (0, Cp - C)))

    # ---- small-graph fused fast path ----
    fused_bytes = (
        Np * Np * 2                      # adj (bf16)
        + Np * Fp * 2                    # x
        + Fp * Hp * 2 + Hp * Cp * 2      # weights
        + (Hp + Cp) * 4                  # biases
        + 2 * Np * Hp * 4                # s1 / h f32 temporaries
        + 3 * Np * Cp * 4                # s2 / z / out
    )
    use_fused = (not force_tiled) and (Np <= 2048) and (fused_bytes * 13 // 10 < budget)

    if use_fused:
        logp = pl.pallas_call(
            functools.partial(gcn_fused_kernel, num_class=C),
            out_shape=jax.ShapeDtypeStruct((Np, Cp), jnp.float32),
            compiler_params=pltpu.CompilerParams(vmem_limit_bytes=budget),
        )(x_p, adj_p, w1_p, b1_p, w2_p, b2_p)
        return logp[:N, :C]

    # ---- large-graph tiled path ----
    proj_params = pltpu.CompilerParams(
        dimension_semantics=("parallel",), vmem_limit_bytes=budget)
    agg_params = pltpu.CompilerParams(
        dimension_semantics=("parallel", "arbitrary"), vmem_limit_bytes=budget)

    # Residency decisions for support1/support2 (x2 for double buffering).
    l1_fixed = (2 * tile * tile * 2 + 2 * Hp * Cp * 2 + 2 * Hp * 4
                + tile * Hp * 4 + 2 * tile * Cp * 2)
    l2_fixed = 2 * tile * tile * 2 + 2 * Cp * 4 + 2 * tile * Cp * 4
    s1_resident = (l1_fixed + 2 * Np * Hp * 2) * 13 // 10 < budget
    s2_resident = (l2_fixed + 2 * Np * Cp * 2) * 13 // 10 < budget

    # support1 = x @ W1 (computed exactly once, row-tiled, weights resident)
    support1 = pl.pallas_call(
        projection_kernel,
        out_shape=jax.ShapeDtypeStruct((Np, Hp), jnp.bfloat16),
        grid_spec=pltpu.PrefetchScalarGridSpec(
            num_scalar_prefetch=0,
            grid=(Np // tile,),
            in_specs=[
                pl.BlockSpec((tile, Fp), lambda i: (i, 0)),
                pl.BlockSpec((Fp, Hp), lambda i: (0, 0)),
            ],
            out_specs=pl.BlockSpec((tile, Hp), lambda i: (i, 0)),
        ),
        compiler_params=proj_params,
    )(x_p, w1_p)

    grid = (Np // tile, Np // tile)

    # layer 1: support2 = relu(adj @ support1 + b1) @ W2
    s1_spec = (pl.BlockSpec((Np, Hp), lambda i, k: (0, 0)) if s1_resident
               else pl.BlockSpec((tile, Hp), lambda i, k: (k, 0)))
    support2 = pl.pallas_call(
        functools.partial(gcn_layer1_kernel, block_k=tile,
                          s1_resident=s1_resident),
        out_shape=jax.ShapeDtypeStruct((Np, Cp), jnp.bfloat16),
        grid_spec=pltpu.PrefetchScalarGridSpec(
            num_scalar_prefetch=0,
            grid=grid,
            in_specs=[
                pl.BlockSpec((tile, tile), lambda i, k: (i, k)),  # adj
                s1_spec,                                          # support1
                pl.BlockSpec((1, Hp), lambda i, k: (0, 0)),       # b1
                pl.BlockSpec((Hp, Cp), lambda i, k: (0, 0)),      # W2
            ],
            out_specs=pl.BlockSpec((tile, Cp), lambda i, k: (i, 0)),
            scratch_shapes=[pltpu.VMEM((tile, Hp), jnp.float32)],
        ),
        compiler_params=agg_params,
    )(adj_p, support1, b1_p, w2_p)

    # layer 2: log_softmax(adj @ support2 + b2), accumulating into out_ref
    s2_spec = (pl.BlockSpec((Np, Cp), lambda i, k: (0, 0)) if s2_resident
               else pl.BlockSpec((tile, Cp), lambda i, k: (k, 0)))
    logp = pl.pallas_call(
        functools.partial(gcn_layer2_kernel, block_k=tile,
                          s2_resident=s2_resident, num_class=C),
        out_shape=jax.ShapeDtypeStruct((Np, Cp), jnp.float32),
        grid_spec=pltpu.PrefetchScalarGridSpec(
            num_scalar_prefetch=0,
            grid=grid,
            in_specs=[
                pl.BlockSpec((tile, tile), lambda i, k: (i, k)),  # adj
                s2_spec,                                          # support2
                pl.BlockSpec((1, Cp), lambda i, k: (0, 0)),       # b2
            ],
            out_specs=pl.BlockSpec((tile, Cp), lambda i, k: (i, 0)),
        ),
        compiler_params=agg_params,
    )(adj_p, support2, b2_p)

    return logp[:N, :C]


# ----------------------------------------------------------------------------
# Parameter init (mimics GraphConvolution.reset_parameters)
# ----------------------------------------------------------------------------
def init_gcn_params(key, num_features, num_hidden, num_class):
    k1, k2, k3, k4 = jax.random.split(key, 4)
    stdv1 = 1.0 / math.sqrt(num_hidden)
    stdv2 = 1.0 / math.sqrt(num_class)
    w1 = jax.random.uniform(k1, (num_features, num_hidden), jnp.float32,
                            minval=-stdv1, maxval=stdv1)
    b1 = jax.random.uniform(k2, (1, num_hidden), jnp.float32,
                            minval=-stdv1, maxval=stdv1)
    w2 = jax.random.uniform(k3, (num_hidden, num_class), jnp.float32,
                            minval=-stdv2, maxval=stdv2)
    b2 = jax.random.uniform(k4, (1, num_class), jnp.float32,
                            minval=-stdv2, maxval=stdv2)
    return w1, b1, w2, b2


if __name__ == "__main__":
    # Small synthetic problem: N=64 nodes, 32 input features, 32 hidden, 16 classes.
    N, F_IN, H, C = 64, 32, 32, 16

    key = jax.random.PRNGKey(0)
    kx, kadj, kparams = jax.random.split(key, 3)

    x = jax.random.normal(kx, (N, F_IN), jnp.float32)

    # Dense "normalized" adjacency: random sparse-ish mask + self loops, row-normalized.
    raw = jax.random.uniform(kadj, (N, N), jnp.float32)
    mask = (raw > 0.9).astype(jnp.float32)
    a = mask + jnp.eye(N, dtype=jnp.float32)
    adj = a / jnp.sum(a, axis=1, keepdims=True)

    w1, b1, w2, b2 = init_gcn_params(kparams, F_IN, H, C)

    # Pure-JAX f32 reference (bf16 MXU inputs => loose tol).
    h_ref = jnp.maximum(adj @ (x @ w1) + b1, 0.0)
    z_ref = adj @ (h_ref @ w2) + b2
    ref = jax.nn.log_softmax(z_ref, axis=1)

    # Fused small-graph path (the default dispatch for this size).
    out_fused = jax.block_until_ready(jax.jit(gcn_forward)(x, adj, w1, b1, w2, b2))

    # Tiled large-graph path (forced) to exercise the gridded kernels too.
    tiled_fn = jax.jit(functools.partial(gcn_forward, force_tiled=True))
    out_tiled = jax.block_until_ready(tiled_fn(x, adj, w1, b1, w2, b2))

    for out in (out_fused, out_tiled):
        assert out.shape == (N, C)
        assert jnp.all(jnp.isfinite(out))
        assert jnp.allclose(out, ref, atol=2e-2, rtol=2e-2), (
            float(jnp.max(jnp.abs(out - ref)))
        )

    print("KERNEL_OK")
</pallas_src>

<mosaic_0001>
module attributes {stable_mosaic.version = 11 : i64} {
  func.func @gcn_fused_kernel(%arg0: memref<128x128xbf16, #tpu.memory_space<vmem>>, %arg1: memref<128x128xbf16, #tpu.memory_space<vmem>>, %arg2: memref<128x128xbf16, #tpu.memory_space<vmem>>, %arg3: memref<1x128xf32, #tpu.memory_space<vmem>>, %arg4: memref<128x128xbf16, #tpu.memory_space<vmem>>, %arg5: memref<1x128xf32, #tpu.memory_space<vmem>>, %arg6: memref<128x128xf32, #tpu.memory_space<vmem>>) attributes {dimension_semantics = [], scalar_prefetch = 0 : i64, scratch_operands = 0 : i64, tpu.core_type = #tpu.core_type<tc>} {
    %c0 = arith.constant 0 : index
    %c0_0 = arith.constant 0 : index
    %0 = vector.load %arg0[%c0, %c0_0] : memref<128x128xbf16, #tpu.memory_space<vmem>>, vector<128x128xbf16>
    %c0_1 = arith.constant 0 : index
    %c0_2 = arith.constant 0 : index
    %1 = vector.load %arg2[%c0_1, %c0_2] : memref<128x128xbf16, #tpu.memory_space<vmem>>, vector<128x128xbf16>
    %cst = arith.constant dense<0.000000e+00> : vector<128x128xf32>
    %2 = tpu.matmul %0, %1, %cst {dimension_numbers = #tpu.dot_dimension_numbers<[1], [0], [0], [1], [0, 0, 1, 1], [], []>} : vector<128x128xbf16>, vector<128x128xbf16>, vector<128x128xf32> -> vector<128x128xf32>
    %c0_3 = arith.constant 0 : index
    %c0_4 = arith.constant 0 : index
    %3 = vector.load %arg1[%c0_3, %c0_4] : memref<128x128xbf16, #tpu.memory_space<vmem>>, vector<128x128xbf16>
    %4 = arith.truncf %2 : vector<128x128xf32> to vector<128x128xbf16>
    %cst_5 = arith.constant dense<0.000000e+00> : vector<128x128xf32>
    %5 = tpu.matmul %3, %4, %cst_5 {dimension_numbers = #tpu.dot_dimension_numbers<[1], [0], [0], [1], [0, 0, 1, 1], [], []>} : vector<128x128xbf16>, vector<128x128xbf16>, vector<128x128xf32> -> vector<128x128xf32>
    %c0_6 = arith.constant 0 : index
    %c0_7 = arith.constant 0 : index
    %6 = vector.load %arg3[%c0_6, %c0_7] : memref<1x128xf32, #tpu.memory_space<vmem>>, vector<1x128xf32>
    %7 = vector.broadcast %6 : vector<1x128xf32> to vector<128x128xf32>
    %8 = arith.addf %5, %7 : vector<128x128xf32>
    %cst_8 = arith.constant 0.000000e+00 : f32
    %9 = vector.broadcast %cst_8 : f32 to vector<128x128xf32>
    %10 = arith.maximumf %8, %9 : vector<128x128xf32>
    %11 = arith.truncf %10 : vector<128x128xf32> to vector<128x128xbf16>
    %c0_9 = arith.constant 0 : index
    %c0_10 = arith.constant 0 : index
    %12 = vector.load %arg4[%c0_9, %c0_10] : memref<128x128xbf16, #tpu.memory_space<vmem>>, vector<128x128xbf16>
    %cst_11 = arith.constant dense<0.000000e+00> : vector<128x128xf32>
    %13 = tpu.matmul %11, %12, %cst_11 {dimension_numbers = #tpu.dot_dimension_numbers<[1], [0], [0], [1], [0, 0, 1, 1], [], []>} : vector<128x128xbf16>, vector<128x128xbf16>, vector<128x128xf32> -> vector<128x128xf32>
    %c0_12 = arith.constant 0 : index
    %c0_13 = arith.constant 0 : index
    %14 = vector.load %arg1[%c0_12, %c0_13] : memref<128x128xbf16, #tpu.memory_space<vmem>>, vector<128x128xbf16>
    %15 = arith.truncf %13 : vector<128x128xf32> to vector<128x128xbf16>
    %cst_14 = arith.constant dense<0.000000e+00> : vector<128x128xf32>
    %16 = tpu.matmul %14, %15, %cst_14 {dimension_numbers = #tpu.dot_dimension_numbers<[1], [0], [0], [1], [0, 0, 1, 1], [], []>} : vector<128x128xbf16>, vector<128x128xbf16>, vector<128x128xf32> -> vector<128x128xf32>
    %c0_15 = arith.constant 0 : index
    %c0_16 = arith.constant 0 : index
    %17 = vector.load %arg5[%c0_15, %c0_16] : memref<1x128xf32, #tpu.memory_space<vmem>>, vector<1x128xf32>
    %18 = vector.broadcast %17 : vector<1x128xf32> to vector<128x128xf32>
    %19 = arith.addf %16, %18 : vector<128x128xf32>
    %20 = tpu.iota {dimensions = array<i32: 1>} : vector<128x128xi32>
    %c16_i32 = arith.constant 16 : i32
    %21 = vector.broadcast %c16_i32 : i32 to vector<128x128xi32>
    %22 = arith.cmpi slt, %20, %21 : vector<128x128xi32>
    %cst_17 = arith.constant 0xFF800000 : f32
    %23 = vector.broadcast %cst_17 : f32 to vector<128x128xf32>
    %24 = arith.select %22, %19, %23 : vector<128x128xi1>, vector<128x128xf32>
    %cst_18 = arith.constant dense<0xFF800000> : vector<128xf32>
    %25 = vector.multi_reduction <maximumf>, %24, %cst_18 [1] : vector<128x128xf32> to vector<128xf32>
    %26 = vector.shape_cast %25 : vector<128xf32> to vector<128x1xf32>
    %27 = vector.broadcast %26 : vector<128x1xf32> to vector<128x128xf32>
    %28 = arith.subf %24, %27 : vector<128x128xf32>
    %29 = math.exp %28 : vector<128x128xf32>
    %cst_19 = arith.constant dense<0.000000e+00> : vector<128xf32>
    %30 = vector.multi_reduction <add>, %29, %cst_19 [1] : vector<128x128xf32> to vector<128xf32>
    %31 = vector.shape_cast %30 : vector<128xf32> to vector<128x1xf32>
    %32 = math.log %31 : vector<128x1xf32>
    %33 = vector.broadcast %32 : vector<128x1xf32> to vector<128x128xf32>
    %34 = arith.subf %28, %33 : vector<128x128xf32>
    %c0_20 = arith.constant 0 : index
    %c0_21 = arith.constant 0 : index
    %35 = vector.load %arg6[%c0_20, %c0_21] : memref<128x128xf32, #tpu.memory_space<vmem>>, vector<128x128xf32>
    tpu.vector_store %arg6[%c0_20, %c0_21], %34 {strides = array<i32>} : memref<128x128xf32, #tpu.memory_space<vmem>>, vector<128x128xf32>,
    return
  }
}

</mosaic_0001>

<bundles_post_ra>
// kernel: gcn_forward.1
= control target key start
LH: loop header
LB: loop body
LE: loop exit
PB: predicated region body
PF: predicated region fallthrough
CT: control target
= control target key end

     0   :  { %s1342_s2 = inlined_call_operand.vmem [shape: bf16[128,128], index: 2, kind: input, shape index: {}]   ;;  %s1343_s0 = inlined_call_operand.vmem [shape: bf16[128,128], index: 0, kind: input, shape index: {}]   ;;  %s1344_s3 = inlined_call_operand.vmem [shape: f32[1,128], index: 3, kind: input, shape index: {}]   ;;  %s1345_s1 = inlined_call_operand.vmem [shape: bf16[128,128], index: 1, kind: input, shape index: {}]   ;;  %s1346_s4 = inlined_call_operand.vmem [shape: bf16[128,128], index: 4, kind: input, shape index: {}]   ;;  %s1347_s5 = inlined_call_operand.vmem [shape: f32[1,128], index: 5, kind: input, shape index: {}]   ;;  %s1348_s6 = inlined_call_operand.vmem [shape: f32[128,128], index: 6, kind: output, shape index: {}]  }
   0x1   :  { %v865_v0 = vld [vmem:[%s1342_s2 + $0x38] sm:$0xff]  ;;  %v864_v1 = vld [vmem:[%s1342_s2 + $0x30] sm:$0xff]  ;;  %v863_v2 = vld [vmem:[%s1342_s2 + $0x28] sm:$0xff] }
   0x2   :  { %151 = vmatpush.bf16.msra.mxu0 %v865_v0  ;;  %v862_v3 = vld [vmem:[%s1342_s2 + $0x20] sm:$0xff]  ;;  %v861_v4 = vld [vmem:[%s1342_s2 + $0x18] sm:$0xff]  ;;  %v860_v5 = vld [vmem:[%s1342_s2 + $0x10] sm:$0xff] }
   0x3   :  { %v859_v6 = vld [vmem:[%s1342_s2 + $0x8] sm:$0xff]  ;;  %v858_v7 = vld [vmem:[%s1342_s2] sm:$0xff]  ;;  %v852_v10 = vld [vmem:[%s1343_s0 + $0x10] sm:$0xff] }
   0x4   :  { %v850_v8 = vld [vmem:[%s1343_s0] sm:$0xff]  ;;  %v851_v9 = vld [vmem:[%s1343_s0 + $0x8] sm:$0xff]  ;;  %v853_v11 = vld [vmem:[%s1343_s0 + $0x18] sm:$0xff] }
   0x5   :  { %v854_v12 = vld [vmem:[%s1343_s0 + $0x20] sm:$0xff]  ;;  %v855_v13 = vld [vmem:[%s1343_s0 + $0x28] sm:$0xff]  ;;  %v856_v14 = vld [vmem:[%s1343_s0 + $0x30] sm:$0xff] }
   0x6   :  { %152 = vmatpush.bf16.msra.mxu0 %v864_v1  ;;  %v857_v15 = vld [vmem:[%s1343_s0 + $0x38] sm:$0xff]  ;;  %v1034_v40 = vld [vmem:[%s1345_s1] sm:$0xff]  ;;  %v1040_v41 = vld [vmem:[%s1345_s1 + $0x8] sm:$0xff] }
   0x7   :  { %v1046_v42 = vld [vmem:[%s1345_s1 + $0x10] sm:$0xff]  ;;  %v1052_v43 = vld [vmem:[%s1345_s1 + $0x18] sm:$0xff]  ;;  %v1058_v44 = vld [vmem:[%s1345_s1 + $0x20] sm:$0xff] }
   0x8   :  { %v881_v45 = vld [vmem:[%s1346_s4 + $0x38] sm:$0xff]  ;;  %v1067_v46 = vld [vmem:[%s1345_s1 + $0x28] sm:$0xff]  ;;  %v880_v47 = vld [vmem:[%s1346_s4 + $0x30] sm:$0xff] }
   0x9   :  { %413 = vmatpush.bf16.msra.mxu2 %v881_v45  ;;  %v879_v48 = vld [vmem:[%s1346_s4 + $0x28] sm:$0xff]  ;;  %v878_v49 = vld [vmem:[%s1346_s4 + $0x20] sm:$0xff]  ;;  %v877_v50 = vld [vmem:[%s1346_s4 + $0x18] sm:$0xff] }
   0xa   :  { %153 = vmatpush.bf16.msra.mxu0 %v863_v2  ;;  %v1085_v51 = vld [vmem:[%s1345_s1 + $0x30] sm:$0xff]  ;;  %v875_v53 = vld [vmem:[%s1346_s4 + $0x8] sm:$0xff]  ;;  %v874_v54 = vld [vmem:[%s1346_s4] sm:$0xff] }
   0xb   :  { %v876_v52 = vld [vmem:[%s1346_s4 + $0x10] sm:$0xff]  ;;  %v1100_v55 = vld [vmem:[%s1345_s1 + $0x38] sm:$0xff]  ;;  %v882_v57 = vld [vmem:[%s1344_s3] ss:$0 sm:$0xff] }
   0xd   :  { %414 = vmatpush.bf16.msra.mxu2 %v880_v47 }
   0xe   :  { %154 = vmatpush.bf16.msra.mxu0 %v862_v3 }
  0x11   :  { %415 = vmatpush.bf16.msra.mxu2 %v879_v48 }
  0x12   :  { %155 = vmatpush.bf16.msra.mxu0 %v861_v4 }
  0x15   :  { %416 = vmatpush.bf16.msra.mxu2 %v878_v49 }
  0x16   :  { %156 = vmatpush.bf16.msra.mxu0 %v860_v5 }
  0x19   :  { %417 = vmatpush.bf16.msra.mxu2 %v877_v50 }
  0x1a   :  { %157 = vmatpush.bf16.msra.mxu0 %v859_v6 }
  0x1d   :  { %418 = vmatpush.bf16.msra.mxu2 %v876_v52 }
  0x1e   :  { %158 = vmatpush.bf16.msra.mxu0 %v858_v7 }
  0x21   :  { %159 = vmatmul.bf16.vlgmr.msra.gmra.mxu0 %v850_v8  ;;  %419 = vmatpush.bf16.msra.mxu2 %v875_v53 }
  0x25   :  { %420 = vmatpush.bf16.msra.mxu2 %v874_v54 }
  0x31   :  { %164 = vmatmul.bf16.gmra.mxu0 %v851_v9 }
  0x41   :  { %169 = vmatmul.bf16.gmra.mxu0 %v852_v10 }
  0x51   :  { %174 = vmatmul.bf16.gmra.mxu0 %v853_v11 }
  0x61   :  { %179 = vmatmul.bf16.gmra.mxu0 %v854_v12 }
  0x71   :  { %184 = vmatmul.bf16.gmra.mxu0 %v855_v13 }
  0x81   :  { %189 = vmatmul.bf16.gmra.mxu0 %v856_v14 }
  0x91   :  { %194 = vmatmul.bf16.gmra.mxu0 %v857_v15 }
  0x9e   :  { %v160_v16 = vpop.f32.mrf.mxu0 }
  0xa6   :  { %v162_v17 = vpop.f32.mrf.mxu0 }
  0xa7   :  { %v216_v18 = vpack.c.bf16 %v162_v17, %v160_v16 }
  0xae   :  { %v165_v19 = vpop.f32.mrf.mxu0 }
  0xb6   :  { %v167_v20 = vpop.f32.mrf.mxu0 }
  0xb7   :  { %v217_v21 = vpack.c.bf16 %v167_v20, %v165_v19 }
  0xbe   :  { %v170_v22 = vpop.f32.mrf.mxu0 }
  0xc6   :  { %v172_v23 = vpop.f32.mrf.mxu0 }
  0xc7   :  { %v218_v24 = vpack.c.bf16 %v172_v23, %v170_v22 }
  0xce   :  { %v175_v25 = vpop.f32.mrf.mxu0 }
  0xd6   :  { %v177_v26 = vpop.f32.mrf.mxu0 }
  0xd7   :  { %v219_v27 = vpack.c.bf16 %v177_v26, %v175_v25 }
  0xde   :  { %v180_v28 = vpop.f32.mrf.mxu0 }
  0xe6   :  { %v182_v29 = vpop.f32.mrf.mxu0 }
  0xe7   :  { %v220_v39 = vpack.c.bf16 %v182_v29, %v180_v28 }
  0xee   :  { %v185_v30 = vpop.f32.mrf.mxu0 }
  0xf6   :  { %v187_v31 = vpop.f32.mrf.mxu0 }
  0xf7   :  { %v221_v38 = vpack.c.bf16 %v187_v31, %v185_v30 }
  0xfe   :  { %v190_v32 = vpop.f32.mrf.mxu0 }
 0x106   :  { %v192_v33 = vpop.f32.mrf.mxu0 }
 0x107   :  { %v222_v37 = vpack.c.bf16 %v192_v33, %v190_v32 }
 0x10e   :  { %v195_v34 = vpop.f32.mrf.mxu0 }
 0x116   :  { %v197_v35 = vpop.f32.mrf.mxu0 }
 0x117   :  { %v223_v36 = vpack.c.bf16 %v197_v35, %v195_v34 }
 0x119   :  { %276 = vmatpush.bf16.msra.mxu1 %v223_v36 }
 0x11d   :  { %277 = vmatpush.bf16.msra.mxu1 %v222_v37 }
 0x121   :  { %278 = vmatpush.bf16.msra.mxu1 %v221_v38 }
 0x125   :  { %279 = vmatpush.bf16.msra.mxu1 %v220_v39 }
 0x129   :  { %280 = vmatpush.bf16.msra.mxu1 %v219_v27 }
 0x12d   :  { %281 = vmatpush.bf16.msra.mxu1 %v218_v24 }
 0x131   :  { %282 = vmatpush.bf16.msra.mxu1 %v217_v21 }
 0x135   :  { %283 = vmatpush.bf16.msra.mxu1 %v216_v18 }
 0x138   :  { %284 = vmatmul.bf16.vlgmr.msra.gmra.mxu1 %v1034_v40 }
 0x148   :  { %289 = vmatmul.bf16.gmra.mxu1 %v1040_v41 }
 0x158   :  { %294 = vmatmul.bf16.gmra.mxu1 %v1046_v42 }
 0x168   :  { %299 = vmatmul.bf16.gmra.mxu1 %v1052_v43 }
 0x178   :  { %304 = vmatmul.bf16.gmra.mxu1 %v1058_v44 }
 0x188   :  { %309 = vmatmul.bf16.gmra.mxu1 %v1067_v46 }
 0x198   :  { %314 = vmatmul.bf16.gmra.mxu1 %v1085_v51 }
 0x1a8   :  { %319 = vmatmul.bf16.gmra.mxu1 %v1100_v55 }
 0x1b5   :  { %v285_v56 = vpop.f32.mrf.mxu1 }
 0x1b6   :  { %v286_v58 = vadd.f32 %v882_v57, %v285_v56 }
 0x1b8   :  { %v325_v61 = vmax.f32 %v286_v58, 0.0 }
 0x1bd   :  { %v287_v59 = vpop.f32.mrf.mxu1 }
 0x1be   :  { %v288_v60 = vadd.f32 %v882_v57, %v287_v59 }
 0x1c0   :  { %v326_v62 = vmax.f32 %v288_v60, 0.0 }
 0x1c2   :  { %v341_v63 = vpack.c.bf16 %v326_v62, %v325_v61 }
 0x1c4   :  { %421 = vmatmul.bf16.vlgmr.msra.gmra.mxu2 %v341_v63 }
 0x1c5   :  { %v290_v0 = vpop.f32.mrf.mxu1 }
 0x1c6   :  { %v291_v1 = vadd.f32 %v882_v57, %v290_v0 }
 0x1c8   :  { %v327_v4 = vmax.f32 %v291_v1, 0.0 }
 0x1cd   :  { %v292_v2 = vpop.f32.mrf.mxu1 }
 0x1ce   :  { %v293_v3 = vadd.f32 %v882_v57, %v292_v2 }
 0x1d0   :  { %v328_v5 = vmax.f32 %v293_v3, 0.0 }
 0x1d2   :  { %v342_v6 = vpack.c.bf16 %v328_v5, %v327_v4 }
 0x1d4   :  { %426 = vmatmul.bf16.gmra.mxu2 %v342_v6 }
 0x1d5   :  { %v295_v7 = vpop.f32.mrf.mxu1 }
 0x1d6   :  { %v296_v8 = vadd.f32 %v882_v57, %v295_v7 }
 0x1d8   :  { %v329_v11 = vmax.f32 %v296_v8, 0.0 }
 0x1dd   :  { %v297_v9 = vpop.f32.mrf.mxu1 }
 0x1de   :  { %v298_v10 = vadd.f32 %v882_v57, %v297_v9 }
 0x1e0   :  { %v330_v12 = vmax.f32 %v298_v10, 0.0 }
 0x1e2   :  { %v343_v13 = vpack.c.bf16 %v330_v12, %v329_v11 }
 0x1e4   :  { %431 = vmatmul.bf16.gmra.mxu2 %v343_v13 }
 0x1e5   :  { %v300_v14 = vpop.f32.mrf.mxu1 }
 0x1e6   :  { %v301_v15 = vadd.f32 %v882_v57, %v300_v14 }
 0x1e8   :  { %v331_v18 = vmax.f32 %v301_v15, 0.0 }
 0x1ed   :  { %v302_v16 = vpop.f32.mrf.mxu1 }
 0x1ee   :  { %v303_v17 = vadd.f32 %v882_v57, %v302_v16 }
 0x1f0   :  { %v332_v19 = vmax.f32 %v303_v17, 0.0  ;;  %v523_v17 = vlaneseq }
 0x1f2   :  { %v344_v20 = vpack.c.bf16 %v332_v19, %v331_v18  ;;  %v1114_v18 = vand.u32 127, %v523_v17 }
 0x1f4   :  { %436 = vmatmul.bf16.gmra.mxu2 %v344_v20  ;;  %vm525_vm0 = vcmp.lt.s32.totalorder %v1114_v18, 16 }
 0x1f5   :  { %v305_v21 = vpop.f32.mrf.mxu1 }
 0x1f6   :  { %v306_v22 = vadd.f32 %v882_v57, %v305_v21 }
 0x1f8   :  { %v333_v25 = vmax.f32 %v306_v22, 0.0 }
 0x1fd   :  { %v307_v23 = vpop.f32.mrf.mxu1 }
 0x1fe   :  { %v308_v24 = vadd.f32 %v882_v57, %v307_v23 }
 0x200   :  { %v334_v26 = vmax.f32 %v308_v24, 0.0 }
 0x202   :  { %v345_v27 = vpack.c.bf16 %v334_v26, %v333_v25 }
 0x204   :  { %441 = vmatmul.bf16.gmra.mxu2 %v345_v27 }
 0x205   :  { %v310_v28 = vpop.f32.mrf.mxu1 }
 0x206   :  { %v311_v29 = vadd.f32 %v882_v57, %v310_v28 }
 0x208   :  { %v335_v32 = vmax.f32 %v311_v29, 0.0 }
 0x20d   :  { %v312_v30 = vpop.f32.mrf.mxu1 }
 0x20e   :  { %v313_v31 = vadd.f32 %v882_v57, %v312_v30 }
 0x210   :  { %v336_v33 = vmax.f32 %v313_v31, 0.0 }
 0x212   :  { %v346_v34 = vpack.c.bf16 %v336_v33, %v335_v32 }
 0x214   :  { %446 = vmatmul.bf16.gmra.mxu2 %v346_v34 }
 0x215   :  { %v315_v35 = vpop.f32.mrf.mxu1 }
 0x216   :  { %v316_v36 = vadd.f32 %v882_v57, %v315_v35 }
 0x218   :  { %v337_v39 = vmax.f32 %v316_v36, 0.0 }
 0x21d   :  { %v317_v37 = vpop.f32.mrf.mxu1 }
 0x21e   :  { %v318_v38 = vadd.f32 %v882_v57, %v317_v37 }
 0x220   :  { %v338_v45 = vmax.f32 %v318_v38, 0.0 }
 0x222   :  { %v347_v47 = vpack.c.bf16 %v338_v45, %v337_v39 }
 0x224   :  { %451 = vmatmul.bf16.gmra.mxu2 %v347_v47 }
 0x225   :  { %v320_v48 = vpop.f32.mrf.mxu1 }
 0x226   :  { %v321_v49 = vadd.f32 %v882_v57, %v320_v48 }
 0x228   :  { %v339_v53 = vmax.f32 %v321_v49, 0.0 }
 0x22d   :  { %v322_v50 = vpop.f32.mrf.mxu1 }
 0x22e   :  { %v323_v52 = vadd.f32 %v882_v57, %v322_v50 }
 0x230   :  { %v340_v54 = vmax.f32 %v323_v52, 0.0 }
 0x232   :  { %v348_v56 = vpack.c.bf16 %v340_v54, %v339_v53 }
 0x234   :  { %456 = vmatmul.bf16.gmra.mxu2 %v348_v56 }
 0x247   :  { %v422_v58 = vpop.f32.mrf.mxu2 }
 0x24f   :  { %v424_v59 = vpop.f32.mrf.mxu2 }
 0x250   :  { %v462_v60 = vpack.c.bf16 %v424_v59, %v422_v58 }
 0x257   :  { %v427_v61 = vpop.f32.mrf.mxu2 }
 0x25f   :  { %v429_v62 = vpop.f32.mrf.mxu2 }
 0x260   :  { %v463_v63 = vpack.c.bf16 %v429_v62, %v427_v61 }
 0x267   :  { %v432_v0 = vpop.f32.mrf.mxu2 }
 0x26f   :  { %v434_v1 = vpop.f32.mrf.mxu2 }
 0x270   :  { %v464_v2 = vpack.c.bf16 %v434_v1, %v432_v0 }
 0x277   :  { %v437_v3 = vpop.f32.mrf.mxu2 }
 0x27f   :  { %v439_v4 = vpop.f32.mrf.mxu2 }
 0x280   :  { %v465_v5 = vpack.c.bf16 %v439_v4, %v437_v3 }
 0x287   :  { %v442_v6 = vpop.f32.mrf.mxu2 }
 0x28f   :  { %v444_v7 = vpop.f32.mrf.mxu2 }
 0x290   :  { %v466_v16 = vpack.c.bf16 %v444_v7, %v442_v6 }
 0x297   :  { %v447_v8 = vpop.f32.mrf.mxu2 }
 0x29f   :  { %v449_v57 = vpop.f32.mrf.mxu2 }
 0x2a0   :  { %v467_v15 = vpack.c.bf16 %v449_v57, %v447_v8 }
 0x2a7   :  { %v452_v9 = vpop.f32.mrf.mxu2 }
 0x2af   :  { %v454_v10 = vpop.f32.mrf.mxu2 }
 0x2b0   :  { %v468_v14 = vpack.c.bf16 %v454_v10, %v452_v9 }
 0x2b7   :  { %v457_v11 = vpop.f32.mrf.mxu2 }
 0x2bf   :  { %v459_v12 = vpop.f32.mrf.mxu2 }
 0x2c0   :  { %v469_v13 = vpack.c.bf16 %v459_v12, %v457_v11 }
 0x2c2   :  { %474 = vmatpush.bf16.msra.mxu3 %v469_v13 }
 0x2c6   :  { %475 = vmatpush.bf16.msra.mxu3 %v468_v14 }
 0x2ca   :  { %476 = vmatpush.bf16.msra.mxu3 %v467_v15 }
 0x2ce   :  { %477 = vmatpush.bf16.msra.mxu3 %v466_v16 }
 0x2d2   :  { %478 = vmatpush.bf16.msra.mxu3 %v465_v5 }
 0x2d6   :  { %479 = vmatpush.bf16.msra.mxu3 %v464_v2 }
 0x2da   :  { %480 = vmatpush.bf16.msra.mxu3 %v463_v63 }
 0x2de   :  { %481 = vmatpush.bf16.msra.mxu3 %v462_v60 }
 0x2e1   :  { %482 = vmatmul.bf16.vlgmr.msra.gmra.mxu3 %v1034_v40  ;;  %v1119_v40 = vld [vmem:[%s1347_s5] ss:$0 sm:$0xff] }
 0x2f1   :  { %487 = vmatmul.bf16.gmra.mxu3 %v1040_v41 }
 0x301   :  { %492 = vmatmul.bf16.gmra.mxu3 %v1046_v42 }
 0x311   :  { %497 = vmatmul.bf16.gmra.mxu3 %v1052_v43 }
 0x321   :  { %502 = vmatmul.bf16.gmra.mxu3 %v1058_v44 }
 0x331   :  { %507 = vmatmul.bf16.gmra.mxu3 %v1067_v46 }
 0x341   :  { %512 = vmatmul.bf16.gmra.mxu3 %v1085_v51 }
 0x351   :  { %517 = vmatmul.bf16.gmra.mxu3 %v1100_v55 }
 0x364   :  { %v483_v41 = vpop.f32.mrf.mxu3 }
 0x365   :  { %v484_v42 = vadd.f32 %v1119_v40, %v483_v41 }
 0x367   :  { %v526_v43 = vsel %vm525_vm0, %v484_v42, -inf }
 0x368   :  { %542 = vmax.xlane.f32.xlu0 %v526_v43 }
 0x36c   :  { %v485_v44 = vpop.f32.mrf.mxu3 }
 0x36d   :  { %v486_v46 = vadd.f32 %v1119_v40, %v485_v44 }
 0x36f   :  { %v1128_v51 = vsel %vm525_vm0, %v486_v46, -inf }
 0x370   :  { %544 = vmax.xlane.f32.xlu0 %v1128_v51 }
 0x374   :  { %v488_v55 = vpop.f32.mrf.mxu3 }
 0x375   :  { %v489_v19 = vadd.f32 %v1119_v40, %v488_v55 }
 0x377   :  { %v1134_v20 = vsel %vm525_vm0, %v489_v19, -inf }
 0x378   :  { %546 = vmax.xlane.f32.xlu1 %v1134_v20 }
 0x37c   :  { %v490_v21 = vpop.f32.mrf.mxu3 }
 0x37d   :  { %v491_v22 = vadd.f32 %v1119_v40, %v490_v21 }
 0x37f   :  { %v1140_v23 = vsel %vm525_vm0, %v491_v22, -inf }
 0x380   :  { %548 = vmax.xlane.f32.xlu1 %v1140_v23 }
 0x384   :  { %v493_v24 = vpop.f32.mrf.mxu3 }
 0x385   :  { %v494_v25 = vadd.f32 %v1119_v40, %v493_v24 }
 0x387   :  { %v1146_v26 = vsel %vm525_vm0, %v494_v25, -inf }
 0x388   :  { %550 = vmax.xlane.f32.xlu2 %v1146_v26 }
 0x38c   :  { %v495_v27 = vpop.f32.mrf.mxu3 }
 0x38d   :  { %v496_v28 = vadd.f32 %v1119_v40, %v495_v27 }
 0x38f   :  { %v1152_v29 = vsel %vm525_vm0, %v496_v28, -inf }
 0x390   :  { %552 = vmax.xlane.f32.xlu2 %v1152_v29 }
 0x394   :  { %v498_v30 = vpop.f32.mrf.mxu3 }
 0x395   :  { %v499_v31 = vadd.f32 %v1119_v40, %v498_v30 }
 0x397   :  { %v1158_v32 = vsel %vm525_vm0, %v499_v31, -inf }
 0x398   :  { %554 = vmax.xlane.f32.xlu0 %v1158_v32 }
 0x39c   :  { %v500_v33 = vpop.f32.mrf.mxu3 }
 0x39d   :  { %v501_v34 = vadd.f32 %v1119_v40, %v500_v33 }
 0x39f   :  { %v1164_v35 = vsel %vm525_vm0, %v501_v34, -inf }
 0x3a0   :  { %556 = vmax.xlane.f32.xlu1 %v1164_v35 }
 0x3a4   :  { %v503_v36 = vpop.f32.mrf.mxu3 }
 0x3a5   :  { %v504_v37 = vadd.f32 %v1119_v40, %v503_v36 }
 0x3a7   :  { %v1170_v38 = vsel %vm525_vm0, %v504_v37, -inf }
 0x3a8   :  { %558 = vmax.xlane.f32.xlu2 %v1170_v38 }
 0x3ac   :  { %v505_v39 = vpop.f32.mrf.mxu3 }
 0x3ad   :  { %v506_v45 = vadd.f32 %v1119_v40, %v505_v39 }
 0x3af   :  { %v1176_v47 = vsel %vm525_vm0, %v506_v45, -inf }
 0x3b0   :  { %560 = vmax.xlane.f32.xlu0 %v1176_v47 }
 0x3b4   :  { %v508_v48 = vpop.f32.mrf.mxu3 }
 0x3b5   :  { %v509_v49 = vadd.f32 %v1119_v40, %v508_v48 }
 0x3b7   :  { %v1182_v50 = vsel %vm525_vm0, %v509_v49, -inf }
 0x3b8   :  { %562 = vmax.xlane.f32.xlu1 %v1182_v50 }
 0x3bc   :  { %v510_v52 = vpop.f32.mrf.mxu3 }
 0x3bd   :  { %v511_v53 = vadd.f32 %v1119_v40, %v510_v52 }
 0x3bf   :  { %v1188_v54 = vsel %vm525_vm0, %v511_v53, -inf }
 0x3c0   :  { %564 = vmax.xlane.f32.xlu2 %v1188_v54 }
 0x3c4   :  { %v513_v56 = vpop.f32.mrf.mxu3 }
 0x3c5   :  { %v514_v58 = vadd.f32 %v1119_v40, %v513_v56 }
 0x3c7   :  { %v1194_v59 = vsel %vm525_vm0, %v514_v58, -inf }
 0x3c8   :  { %566 = vmax.xlane.f32.xlu0 %v1194_v59 }
 0x3cc   :  { %v515_v60 = vpop.f32.mrf.mxu3 }
 0x3cd   :  { %v516_v61 = vadd.f32 %v1119_v40, %v515_v60 }
 0x3cf   :  { %v1200_v62 = vsel %vm525_vm0, %v516_v61, -inf }
 0x3d0   :  { %568 = vmax.xlane.f32.xlu1 %v1200_v62 }
 0x3d4   :  { %v518_v63 = vpop.f32.mrf.mxu3 }
 0x3d5   :  { %v519_v0 = vadd.f32 %v1119_v40, %v518_v63 }
 0x3d7   :  { %v1206_v1 = vsel %vm525_vm0, %v519_v0, -inf }
 0x3d8   :  { %570 = vmax.xlane.f32.xlu2 %v1206_v1 }
 0x3db   :  { %v543_v2 = vpop.xlane.xlu0 %542 }
 0x3dc   :  { %v1209_v3 = vsub.f32 %v526_v43, %v543_v2  ;;  %v520_v4 = vpop.f32.mrf.mxu3 }
 0x3dd   :  { %v521_v5 = vadd.f32 %v1119_v40, %v520_v4 }
 0x3de   :  { %v590_v6 = vmul.f32 1.442695, %v1209_v3 }
 0x3df   :  { %v1215_v7 = vsel %vm525_vm0, %v521_v5, -inf }
 0x3e0   :  { %884 = vpow2.f32 %v590_v6  ;;  %572 = vmax.xlane.f32.xlu0 %v1215_v7 }
 0x3e3   :  { %v545_v8 = vpop.xlane.xlu0 %544 }
 0x3e4   :  { %v1219_v57 = vsub.f32 %v1128_v51, %v545_v8 }
 0x3e6   :  { %v885_v9 = vpop.eup %884  ;;  %v592_v10 = vmul.f32 1.442695, %v1219_v57 }
 0x3e7   :  { %622 = vadd.xlane.f32.xlu1 %v885_v9 }
 0x3e8   :  { %886 = vpow2.f32 %v592_v10 }
 0x3eb   :  { %v547_v11 = vpop.xlane.xlu1 %546 }
 0x3ec   :  { %v1223_v12 = vsub.f32 %v1134_v20, %v547_v11 }
 0x3ee   :  { %v887_v13 = vpop.eup %886  ;;  %v594_v14 = vmul.f32 1.442695, %v1223_v12 }
 0x3ef   :  { %624 = vadd.xlane.f32.xlu2 %v887_v13 }
 0x3f0   :  { %888 = vpow2.f32 %v594_v14 }
 0x3f3   :  { %v549_v15 = vpop.xlane.xlu1 %548 }
 0x3f4   :  { %v1227_v16 = vsub.f32 %v1140_v23, %v549_v15 }
 0x3f6   :  { %v889_v17 = vpop.eup %888  ;;  %v596_v18 = vmul.f32 1.442695, %v1227_v16 }
 0x3f7   :  { %626 = vadd.xlane.f32.xlu0 %v889_v17 }
 0x3f8   :  { %890 = vpow2.f32 %v596_v18 }
 0x3fb   :  { %v551_v40 = vpop.xlane.xlu2 %550 }
 0x3fc   :  { %v1231_v41 = vsub.f32 %v1146_v26, %v551_v40 }
 0x3fe   :  { %v891_v42 = vpop.eup %890  ;;  %v598_v43 = vmul.f32 1.442695, %v1231_v41 }
 0x3ff   :  { %628 = vadd.xlane.f32.xlu1 %v891_v42 }
 0x400   :  { %892 = vpow2.f32 %v598_v43 }
 0x403   :  { %v553_v44 = vpop.xlane.xlu2 %552 }
 0x404   :  { %v1235_v46 = vsub.f32 %v1152_v29, %v553_v44 }
 0x406   :  { %v893_v51 = vpop.eup %892  ;;  %v600_v55 = vmul.f32 1.442695, %v1235_v46 }
 0x407   :  { %630 = vadd.xlane.f32.xlu2 %v893_v51 }
 0x408   :  { %894 = vpow2.f32 %v600_v55 }
 0x40b   :  { %v555_v19 = vpop.xlane.xlu0 %554 }
 0x40c   :  { %v1239_v20 = vsub.f32 %v1158_v32, %v555_v19 }
 0x40e   :  { %v895_v21 = vpop.eup %894  ;;  %v602_v22 = vmul.f32 1.442695, %v1239_v20 }
 0x40f   :  { %632 = vadd.xlane.f32.xlu0 %v895_v21 }
 0x410   :  { %896 = vpow2.f32 %v602_v22 }
 0x413   :  { %v557_v23 = vpop.xlane.xlu1 %556 }
 0x414   :  { %v1243_v24 = vsub.f32 %v1164_v35, %v557_v23 }
 0x416   :  { %v897_v25 = vpop.eup %896  ;;  %v604_v26 = vmul.f32 1.442695, %v1243_v24 }
 0x417   :  { %634 = vadd.xlane.f32.xlu1 %v897_v25 }
 0x418   :  { %898 = vpow2.f32 %v604_v26 }
 0x41b   :  { %v559_v27 = vpop.xlane.xlu2 %558 }
 0x41c   :  { %v1247_v28 = vsub.f32 %v1170_v38, %v559_v27 }
 0x41e   :  { %v899_v29 = vpop.eup %898  ;;  %v606_v30 = vmul.f32 1.442695, %v1247_v28 }
 0x41f   :  { %636 = vadd.xlane.f32.xlu2 %v899_v29 }
 0x420   :  { %900 = vpow2.f32 %v606_v30 }
 0x423   :  { %v561_v31 = vpop.xlane.xlu0 %560 }
 0x424   :  { %v1251_v32 = vsub.f32 %v1176_v47, %v561_v31 }
 0x426   :  { %v901_v33 = vpop.eup %900  ;;  %v608_v34 = vmul.f32 1.442695, %v1251_v32 }
 0x427   :  { %638 = vadd.xlane.f32.xlu0 %v901_v33 }
 0x428   :  { %902 = vpow2.f32 %v608_v34 }
 0x42b   :  { %v563_v35 = vpop.xlane.xlu1 %562 }
 0x42c   :  { %v1255_v36 = vsub.f32 %v1182_v50, %v563_v35 }
 0x42e   :  { %v903_v37 = vpop.eup %902  ;;  %v610_v38 = vmul.f32 1.442695, %v1255_v36 }
 0x42f   :  { %640 = vadd.xlane.f32.xlu1 %v903_v37 }
 0x430   :  { %904 = vpow2.f32 %v610_v38 }
 0x433   :  { %v565_v39 = vpop.xlane.xlu2 %564 }
 0x434   :  { %v1259_v45 = vsub.f32 %v1188_v54, %v565_v39 }
 0x436   :  { %v905_v47 = vpop.eup %904  ;;  %v612_v48 = vmul.f32 1.442695, %v1259_v45 }
 0x437   :  { %642 = vadd.xlane.f32.xlu2 %v905_v47 }
 0x438   :  { %906 = vpow2.f32 %v612_v48 }
 0x43b   :  { %v567_v49 = vpop.xlane.xlu0 %566 }
 0x43c   :  { %v1263_v52 = vsub.f32 %v1194_v59, %v567_v49 }
 0x43e   :  { %v907_v50 = vpop.eup %906  ;;  %v614_v53 = vmul.f32 1.442695, %v1263_v52 }
 0x43f   :  { %644 = vadd.xlane.f32.xlu0 %v907_v50 }
 0x440   :  { %908 = vpow2.f32 %v614_v53 }
 0x443   :  { %v569_v56 = vpop.xlane.xlu1 %568 }
 0x444   :  { %v1267_v58 = vsub.f32 %v1200_v62, %v569_v56 }
 0x446   :  { %v909_v54 = vpop.eup %908  ;;  %v616_v60 = vmul.f32 1.442695, %v1267_v58 }
 0x447   :  { %646 = vadd.xlane.f32.xlu1 %v909_v54 }
 0x448   :  { %910 = vpow2.f32 %v616_v60 }
 0x44b   :  { %v571_v61 = vpop.xlane.xlu2 %570 }
 0x44c   :  { %v1271_v63 = vsub.f32 %v1206_v1, %v571_v61 }
 0x44e   :  { %v911_v59 = vpop.eup %910  ;;  %v618_v0 = vmul.f32 1.442695, %v1271_v63 }
 0x44f   :  { %648 = vadd.xlane.f32.xlu2 %v911_v59 }
 0x450   :  { %912 = vpow2.f32 %v618_v0 }
 0x453   :  { %v573_v2 = vpop.xlane.xlu0 %572 }
 0x454   :  { %v1275_v4 = vsub.f32 %v1215_v7, %v573_v2 }
 0x456   :  { %v913_v62 = vpop.eup %912  ;;  %v620_v5 = vmul.f32 1.442695, %v1275_v4 }
 0x457   :  { %650 = vadd.xlane.f32.xlu0 %v913_v62 }
 0x458   :  { %914 = vpow2.f32 %v620_v5 }
 0x45a   :  { %v623_v6 = vpop.xlane.xlu1 %622 }
 0x45b   :  { %916 = vlog2.f32 %v623_v6 }
 0x45e   :  { %v915_v8 = vpop.eup %914 }
 0x45f   :  { %652 = vadd.xlane.f32.xlu1 %v915_v8 }
 0x461   :  { %v917_v1 = vpop.eup %916 }
 0x462   :  { %v655_v9 = vmul.f32 0.6931472, %v917_v1  ;;  %v625_v10 = vpop.xlane.xlu2 %624 }
 0x463   :  { %918 = vlog2.f32 %v625_v10 }
 0x464   :  { %v686_v11 = vsub.f32 %v1209_v3, %v655_v9 }
 0x466   :  { %702 = vst [vmem:[%s1348_s6] sm:$0xff] %v686_v11 }
 0x469   :  { %v919_v7 = vpop.eup %918 }
 0x46a   :  { %v657_v13 = vmul.f32 0.6931472, %v919_v7  ;;  %v627_v14 = vpop.xlane.xlu0 %626 }
 0x46b   :  { %920 = vlog2.f32 %v627_v14 }
 0x46c   :  { %v687_v15 = vsub.f32 %v1219_v57, %v657_v13 }
 0x46e   :  { %703 = vst [vmem:[%s1348_s6 + $0x8] sm:$0xff] %v687_v15 }
 0x471   :  { %v921_v17 = vpop.eup %920 }
 0x472   :  { %v659_v18 = vmul.f32 0.6931472, %v921_v17  ;;  %v629_v40 = vpop.xlane.xlu1 %628 }
 0x473   :  { %922 = vlog2.f32 %v629_v40 }
 0x474   :  { %v688_v3 = vsub.f32 %v1223_v12, %v659_v18 }
 0x476   :  { %704 = vst [vmem:[%s1348_s6 + $0x10] sm:$0xff] %v688_v3 }
 0x479   :  { %v923_v42 = vpop.eup %922 }
 0x47a   :  { %v661_v43 = vmul.f32 0.6931472, %v923_v42  ;;  %v631_v44 = vpop.xlane.xlu2 %630 }
 0x47b   :  { %924 = vlog2.f32 %v631_v44 }
 0x47c   :  { %v689_v57 = vsub.f32 %v1227_v16, %v661_v43 }
 0x47e   :  { %705 = vst [vmem:[%s1348_s6 + $0x18] sm:$0xff] %v689_v57 }
 0x481   :  { %v925_v51 = vpop.eup %924 }
 0x482   :  { %v663_v55 = vmul.f32 0.6931472, %v925_v51  ;;  %v633_v19 = vpop.xlane.xlu0 %632 }
 0x483   :  { %926 = vlog2.f32 %v633_v19 }
 0x484   :  { %v690_v12 = vsub.f32 %v1231_v41, %v663_v55 }
 0x486   :  { %706 = vst [vmem:[%s1348_s6 + $0x20] sm:$0xff] %v690_v12 }
 0x489   :  { %v927_v21 = vpop.eup %926 }
 0x48a   :  { %v665_v22 = vmul.f32 0.6931472, %v927_v21  ;;  %v635_v23 = vpop.xlane.xlu1 %634 }
 0x48b   :  { %928 = vlog2.f32 %v635_v23 }
 0x48c   :  { %v691_v16 = vsub.f32 %v1235_v46, %v665_v22 }
 0x48e   :  { %707 = vst [vmem:[%s1348_s6 + $0x28] sm:$0xff] %v691_v16 }
 0x491   :  { %v929_v25 = vpop.eup %928 }
 0x492   :  { %v667_v26 = vmul.f32 0.6931472, %v929_v25  ;;  %v637_v27 = vpop.xlane.xlu2 %636 }
 0x493   :  { %930 = vlog2.f32 %v637_v27 }
 0x494   :  { %v692_v41 = vsub.f32 %v1239_v20, %v667_v26 }
 0x496   :  { %708 = vst [vmem:[%s1348_s6 + $0x30] sm:$0xff] %v692_v41 }
 0x499   :  { %v931_v29 = vpop.eup %930 }
 0x49a   :  { %v669_v30 = vmul.f32 0.6931472, %v931_v29  ;;  %v639_v31 = vpop.xlane.xlu0 %638 }
 0x49b   :  { %932 = vlog2.f32 %v639_v31 }
 0x49c   :  { %v693_v46 = vsub.f32 %v1243_v24, %v669_v30 }
 0x49e   :  { %709 = vst [vmem:[%s1348_s6 + $0x38] sm:$0xff] %v693_v46 }
 0x4a1   :  { %v933_v33 = vpop.eup %932 }
 0x4a2   :  { %v671_v34 = vmul.f32 0.6931472, %v933_v33  ;;  %v641_v35 = vpop.xlane.xlu1 %640 }
 0x4a3   :  { %934 = vlog2.f32 %v641_v35 }
 0x4a4   :  { %v694_v20 = vsub.f32 %v1247_v28, %v671_v34 }
 0x4a6   :  { %710 = vst [vmem:[%s1348_s6 + $0x40] sm:$0xff] %v694_v20 }
 0x4a9   :  { %v935_v37 = vpop.eup %934 }
 0x4aa   :  { %v673_v38 = vmul.f32 0.6931472, %v935_v37  ;;  %v643_v39 = vpop.xlane.xlu2 %642 }
 0x4ab   :  { %936 = vlog2.f32 %v643_v39 }
 0x4ac   :  { %v695_v24 = vsub.f32 %v1251_v32, %v673_v38 }
 0x4ae   :  { %711 = vst [vmem:[%s1348_s6 + $0x48] sm:$0xff] %v695_v24 }
 0x4b1   :  { %v937_v47 = vpop.eup %936 }
 0x4b2   :  { %v675_v48 = vmul.f32 0.6931472, %v937_v47  ;;  %v645_v49 = vpop.xlane.xlu0 %644 }
 0x4b3   :  { %938 = vlog2.f32 %v645_v49 }
 0x4b4   :  { %v696_v28 = vsub.f32 %v1255_v36, %v675_v48 }
 0x4b6   :  { %712 = vst [vmem:[%s1348_s6 + $0x50] sm:$0xff] %v696_v28 }
 0x4b9   :  { %v939_v50 = vpop.eup %938 }
 0x4ba   :  { %v677_v53 = vmul.f32 0.6931472, %v939_v50  ;;  %v647_v56 = vpop.xlane.xlu1 %646 }
 0x4bb   :  { %940 = vlog2.f32 %v647_v56 }
 0x4bc   :  { %v697_v32 = vsub.f32 %v1259_v45, %v677_v53 }
 0x4be   :  { %713 = vst [vmem:[%s1348_s6 + $0x58] sm:$0xff] %v697_v32 }
 0x4c1   :  { %v941_v54 = vpop.eup %940 }
 0x4c2   :  { %v679_v60 = vmul.f32 0.6931472, %v941_v54  ;;  %v649_v61 = vpop.xlane.xlu2 %648 }
 0x4c3   :  { %942 = vlog2.f32 %v649_v61 }
 0x4c4   :  { %v698_v36 = vsub.f32 %v1263_v52, %v679_v60 }
 0x4c6   :  { %714 = vst [vmem:[%s1348_s6 + $0x60] sm:$0xff] %v698_v36 }
 0x4c9   :  { %v943_v59 = vpop.eup %942 }
 0x4ca   :  { %v681_v0 = vmul.f32 0.6931472, %v943_v59  ;;  %v651_v2 = vpop.xlane.xlu0 %650 }
 0x4cb   :  { %944 = vlog2.f32 %v651_v2 }
 0x4cc   :  { %v699_v45 = vsub.f32 %v1267_v58, %v681_v0 }
 0x4ce   :  { %715 = vst [vmem:[%s1348_s6 + $0x68] sm:$0xff] %v699_v45 }
 0x4d1   :  { %v945_v62 = vpop.eup %944 }
 0x4d2   :  { %v683_v5 = vmul.f32 0.6931472, %v945_v62  ;;  %v653_v6 = vpop.xlane.xlu1 %652 }
 0x4d3   :  { %946 = vlog2.f32 %v653_v6 }
 0x4d4   :  { %v700_v52 = vsub.f32 %v1271_v63, %v683_v5 }
 0x4d6   :  { %716 = vst [vmem:[%s1348_s6 + $0x70] sm:$0xff] %v700_v52 }
 0x4d9   :  { %v947_v8 = vpop.eup %946 }
 0x4da   :  { %v685_v1 = vmul.f32 0.6931472, %v947_v8 }
 0x4dc   :  { %v701_v9 = vsub.f32 %v1275_v4, %v685_v1 }
 0x4de   :  { %717 = vst [vmem:[%s1348_s6 + $0x78] sm:$0xff] %v701_v9 }

</bundles_post_ra>
